<compile_context>
chip_gen: v7x
topology: tpu7x:2x2x1
jax: 0.10.0
libtpu: 0.0.40
codegen_flags: <defaults>
</compile_context>

<pallas_src>
import jax
import jax.numpy as jnp
from jax.experimental import pallas as pl
from jax.experimental.pallas import tpu as pltpu

INPUT_DIM = 5
HIDDEN_DIMS = [256, 128, 64, 32, 16]
OUT_DIM = 2
TM_MAX = 2048  # max batch tile (activations ~2 MB f32 / 1 MB bf16 at this size)


def _mlp_kernel(x_ref,
                w1_ref, b1_ref, w2_ref, b2_ref, w3_ref, b3_ref,
                w4_ref, b4_ref, w5_ref, b5_ref, wd_ref, bd_ref,
                o_ref):
    # MXU operands in bf16, accumulation + elementwise math in f32.
    h = x_ref[...].astype(jnp.bfloat16)

    def linear_relu(h_bf16, w_ref, b_ref):
        y = jnp.dot(h_bf16, w_ref[...], preferred_element_type=jnp.float32)
        y = jnp.maximum(y + b_ref[...], 0.0)   # bias + ReLU in f32 (VPU)
        return y.astype(jnp.bfloat16)

    h = linear_relu(h, w1_ref, b1_ref)   # dropout1: identity (eval)
    h = linear_relu(h, w2_ref, b2_ref)   # dropout2: identity (eval)
    h = linear_relu(h, w3_ref, b3_ref)   # dropout3: identity (eval)
    h = linear_relu(h, w4_ref, b4_ref)   # dropout4: identity (eval)
    h = linear_relu(h, w5_ref, b5_ref)   # dropout5: identity (eval)

    # fc6 + softmax folded into a delta-logit matvec:
    #   softmax([l0, l1])[1] == sigmoid(l1 - l0),  l1 - l0 = h @ wd + bd.
    l = jnp.dot(h, wd_ref[...], preferred_element_type=jnp.float32) + bd_ref[...]
    # IEEE-safe sigmoid: exp(-l) -> inf for very negative l gives p1 == 0 (no NaN).
    p1 = 1.0 / (1.0 + jnp.exp(-l))
    o_ref[:, 0:1] = (1.0 - p1).astype(o_ref.dtype)
    o_ref[:, 1:2] = p1.astype(o_ref.dtype)


def _resident_spec(shape):
    """Whole-array block with a constant index map -> operand stays VMEM-resident."""
    nd = len(shape)
    return pl.BlockSpec(shape, lambda i, _nd=nd: (0,) * _nd)


def _prepare_kernel_params(params):
    """params: flat [w1,b1,...,w6,b6]; weights [in,out] f32, biases [1,out] f32.

    Returns the 12 kernel operands: w1..w5 in bf16, b1..b5 in f32, plus the
    folded final layer wd (bf16, [16,1]) and bd (f32, [1,1])."""
    kp = []
    for i in range(5):
        w, b = params[2 * i], params[2 * i + 1]
        kp.append(w.astype(jnp.bfloat16))
        kp.append(b.astype(jnp.float32))
    w6, b6 = params[10], params[11]
    wd = (w6[:, 1:2] - w6[:, 0:1]).astype(jnp.bfloat16)   # [16, 1]
    bd = (b6[:, 1:2] - b6[:, 0:1]).astype(jnp.float32)    # [1, 1]
    kp += [wd, bd]
    return kp


def complex_meta_ensemble_forward(x, params, tm=None):
    """x: [B, INPUT_DIM] float32.  params: flat list [w1,b1,...,w6,b6] with
    weights in [in, out] layout and biases in [1, out] layout (float32)."""
    B = x.shape[0]

    if tm is None:
        # Adaptive tile: cap padding waste at <8 rows/tile, and ensure >=2 tiles
        # (when B is big enough) so the parallel axis can split across v7x's TCs.
        n_tiles = max(pl.cdiv(B, TM_MAX), 1)
        if B >= 16 and n_tiles < 2:
            n_tiles = 2
        tm = max(8, pl.cdiv(pl.cdiv(B, n_tiles), 8) * 8)
    else:
        tm = max(8, (tm // 8) * 8)  # only the f32 sublane multiple (8) is required

    b_pad = pl.cdiv(B, tm) * tm
    x = x.astype(jnp.float32)
    if b_pad != B:
        x = jnp.pad(x, ((0, b_pad - B), (0, 0)))
    nb = b_pad // tm

    kparams = _prepare_kernel_params(params)

    in_specs = [pl.BlockSpec((tm, INPUT_DIM), lambda i: (i, 0))]
    in_specs += [_resident_spec(p.shape) for p in kparams]
    out_spec = pl.BlockSpec((tm, OUT_DIM), lambda i: (i, 0))

    out = pl.pallas_call(
        _mlp_kernel,
        out_shape=jax.ShapeDtypeStruct((b_pad, OUT_DIM), jnp.float32),
        grid=(nb,),
        in_specs=in_specs,
        out_specs=out_spec,
        compiler_params=pltpu.CompilerParams(
            dimension_semantics=("parallel",)),
    )(x, *kparams)
    return out[:B]


def init_params(key):
    """Deterministic init matching ComplexMetaEnsemble.__init__ shapes
    (PyTorch-default-like uniform init).  Weights stored as [in, out]."""
    dims = [INPUT_DIM] + HIDDEN_DIMS + [OUT_DIM]
    params = []
    for i in range(len(dims) - 1):
        fan_in, fan_out = dims[i], dims[i + 1]
        key, kw, kb = jax.random.split(key, 3)
        bound = 1.0 / (fan_in ** 0.5)
        w = jax.random.uniform(kw, (fan_in, fan_out), jnp.float32, -bound, bound)
        b = jax.random.uniform(kb, (1, fan_out), jnp.float32, -bound, bound)
        params += [w, b]
    return params


def reference_forward(x, params):
    """Pure-JAX f32 reference of the PyTorch forward (eval mode)."""
    h = x.astype(jnp.float32)
    for i in range(5):
        w, b = params[2 * i], params[2 * i + 1]
        h = jnp.maximum(h @ w + b, 0.0)
    logits = h @ params[10] + params[11]
    return jax.nn.softmax(logits, axis=1)


if __name__ == "__main__":
    key = jax.random.PRNGKey(0)
    kx, kp = jax.random.split(key)
    B = 64
    x = jax.random.normal(kx, (B, INPUT_DIM), jnp.float32)
    params = init_params(kp)

    # Adaptive tiling picks tm=32, grid=(2,) here -> exercises a multi-tile grid.
    out = complex_meta_ensemble_forward(x, params)
    out = jax.block_until_ready(out)

    ref = reference_forward(x, params)
    assert out.shape == (B, OUT_DIM)
    # Probabilities sum to 1 (by construction p0 = 1 - p1).
    assert jnp.allclose(jnp.sum(out, axis=1), 1.0, atol=1e-5)
    # bf16 MXU operands with f32 accumulation -> compare to f32 ref loosely.
    assert jnp.allclose(out, ref, atol=3e-2, rtol=0.0), float(jnp.max(jnp.abs(out - ref)))

    print("KERNEL_OK")
</pallas_src>

<mosaic_0001>
module attributes {stable_mosaic.version = 11 : i64} {
  func.func @_mlp_kernel(%arg0: i32, %arg1: memref<32x5xf32, #tpu.memory_space<vmem>>, %arg2: memref<5x256xbf16, #tpu.memory_space<vmem>>, %arg3: memref<1x256xf32, #tpu.memory_space<vmem>>, %arg4: memref<256x128xbf16, #tpu.memory_space<vmem>>, %arg5: memref<1x128xf32, #tpu.memory_space<vmem>>, %arg6: memref<128x64xbf16, #tpu.memory_space<vmem>>, %arg7: memref<1x64xf32, #tpu.memory_space<vmem>>, %arg8: memref<64x32xbf16, #tpu.memory_space<vmem>>, %arg9: memref<1x32xf32, #tpu.memory_space<vmem>>, %arg10: memref<32x16xbf16, #tpu.memory_space<vmem>>, %arg11: memref<1x16xf32, #tpu.memory_space<vmem>>, %arg12: memref<16x1xbf16, #tpu.memory_space<vmem>>, %arg13: memref<1x1xf32, #tpu.memory_space<vmem>>, %arg14: memref<32x2xf32, #tpu.memory_space<vmem>>) attributes {dimension_semantics = [#tpu.dimension_semantics<parallel>], iteration_bounds = array<i64: 2>, scalar_prefetch = 0 : i64, scratch_operands = 0 : i64, tpu.core_type = #tpu.core_type<tc>, window_params = [{transform_indices = @transform_0, window_bounds = array<i64: 32, 5>}, {pipeline_mode = #tpu.pipeline_mode<synchronous>, transform_indices = @transform_1, window_bounds = array<i64: 5, 256>}, {pipeline_mode = #tpu.pipeline_mode<synchronous>, transform_indices = @transform_2, window_bounds = array<i64: 1, 256>}, {pipeline_mode = #tpu.pipeline_mode<synchronous>, transform_indices = @transform_3, window_bounds = array<i64: 256, 128>}, {pipeline_mode = #tpu.pipeline_mode<synchronous>, transform_indices = @transform_4, window_bounds = array<i64: 1, 128>}, {pipeline_mode = #tpu.pipeline_mode<synchronous>, transform_indices = @transform_5, window_bounds = array<i64: 128, 64>}, {pipeline_mode = #tpu.pipeline_mode<synchronous>, transform_indices = @transform_6, window_bounds = array<i64: 1, 64>}, {pipeline_mode = #tpu.pipeline_mode<synchronous>, transform_indices = @transform_7, window_bounds = array<i64: 64, 32>}, {pipeline_mode = #tpu.pipeline_mode<synchronous>, transform_indices = @transform_8, window_bounds = array<i64: 1, 32>}, {pipeline_mode = #tpu.pipeline_mode<synchronous>, transform_indices = @transform_9, window_bounds = array<i64: 32, 16>}, {pipeline_mode = #tpu.pipeline_mode<synchronous>, transform_indices = @transform_10, window_bounds = array<i64: 1, 16>}, {pipeline_mode = #tpu.pipeline_mode<synchronous>, transform_indices = @transform_11, window_bounds = array<i64: 16, 1>}, {pipeline_mode = #tpu.pipeline_mode<synchronous>, transform_indices = @transform_12, window_bounds = array<i64: 1, 1>}, {transform_indices = @transform_13, window_bounds = array<i64: 32, 2>}]} {
    %c0 = arith.constant 0 : index
    %c0_0 = arith.constant 0 : index
    %0 = vector.load %arg1[%c0, %c0_0] : memref<32x5xf32, #tpu.memory_space<vmem>>, vector<32x5xf32>
    %1 = arith.truncf %0 : vector<32x5xf32> to vector<32x5xbf16>
    %c0_1 = arith.constant 0 : index
    %c0_2 = arith.constant 0 : index
    %2 = vector.load %arg2[%c0_1, %c0_2] : memref<5x256xbf16, #tpu.memory_space<vmem>>, vector<5x256xbf16>
    %cst = arith.constant dense<0.000000e+00> : vector<32x256xf32>
    %3 = tpu.matmul %1, %2, %cst {dimension_numbers = #tpu.dot_dimension_numbers<[1], [0], [0], [1], [0, 0, 1, 1], [], []>} : vector<32x5xbf16>, vector<5x256xbf16>, vector<32x256xf32> -> vector<32x256xf32>
    %c0_3 = arith.constant 0 : index
    %c0_4 = arith.constant 0 : index
    %4 = vector.load %arg3[%c0_3, %c0_4] : memref<1x256xf32, #tpu.memory_space<vmem>>, vector<1x256xf32>
    %5 = vector.broadcast %4 : vector<1x256xf32> to vector<32x256xf32>
    %6 = arith.addf %3, %5 : vector<32x256xf32>
    %cst_5 = arith.constant 0.000000e+00 : f32
    %7 = vector.broadcast %cst_5 : f32 to vector<32x256xf32>
    %8 = arith.maximumf %6, %7 : vector<32x256xf32>
    %9 = arith.truncf %8 : vector<32x256xf32> to vector<32x256xbf16>
    %c0_6 = arith.constant 0 : index
    %c0_7 = arith.constant 0 : index
    %10 = vector.load %arg4[%c0_6, %c0_7] : memref<256x128xbf16, #tpu.memory_space<vmem>>, vector<256x128xbf16>
    %cst_8 = arith.constant dense<0.000000e+00> : vector<32x128xf32>
    %11 = tpu.matmul %9, %10, %cst_8 {dimension_numbers = #tpu.dot_dimension_numbers<[1], [0], [0], [1], [0, 0, 1, 1], [], []>} : vector<32x256xbf16>, vector<256x128xbf16>, vector<32x128xf32> -> vector<32x128xf32>
    %c0_9 = arith.constant 0 : index
    %c0_10 = arith.constant 0 : index
    %12 = vector.load %arg5[%c0_9, %c0_10] : memref<1x128xf32, #tpu.memory_space<vmem>>, vector<1x128xf32>
    %13 = vector.broadcast %12 : vector<1x128xf32> to vector<32x128xf32>
    %14 = arith.addf %11, %13 : vector<32x128xf32>
    %cst_11 = arith.constant 0.000000e+00 : f32
    %15 = vector.broadcast %cst_11 : f32 to vector<32x128xf32>
    %16 = arith.maximumf %14, %15 : vector<32x128xf32>
    %17 = arith.truncf %16 : vector<32x128xf32> to vector<32x128xbf16>
    %c0_12 = arith.constant 0 : index
    %c0_13 = arith.constant 0 : index
    %18 = vector.load %arg6[%c0_12, %c0_13] : memref<128x64xbf16, #tpu.memory_space<vmem>>, vector<128x64xbf16>
    %cst_14 = arith.constant dense<0.000000e+00> : vector<32x64xf32>
    %19 = tpu.matmul %17, %18, %cst_14 {dimension_numbers = #tpu.dot_dimension_numbers<[1], [0], [0], [1], [0, 0, 1, 1], [], []>} : vector<32x128xbf16>, vector<128x64xbf16>, vector<32x64xf32> -> vector<32x64xf32>
    %c0_15 = arith.constant 0 : index
    %c0_16 = arith.constant 0 : index
    %20 = vector.load %arg7[%c0_15, %c0_16] : memref<1x64xf32, #tpu.memory_space<vmem>>, vector<1x64xf32>
    %21 = vector.broadcast %20 : vector<1x64xf32> to vector<32x64xf32>
    %22 = arith.addf %19, %21 : vector<32x64xf32>
    %cst_17 = arith.constant 0.000000e+00 : f32
    %23 = vector.broadcast %cst_17 : f32 to vector<32x64xf32>
    %24 = arith.maximumf %22, %23 : vector<32x64xf32>
    %25 = arith.truncf %24 : vector<32x64xf32> to vector<32x64xbf16>
    %c0_18 = arith.constant 0 : index
    %c0_19 = arith.constant 0 : index
    %26 = vector.load %arg8[%c0_18, %c0_19] : memref<64x32xbf16, #tpu.memory_space<vmem>>, vector<64x32xbf16>
    %cst_20 = arith.constant dense<0.000000e+00> : vector<32x32xf32>
    %27 = tpu.matmul %25, %26, %cst_20 {dimension_numbers = #tpu.dot_dimension_numbers<[1], [0], [0], [1], [0, 0, 1, 1], [], []>} : vector<32x64xbf16>, vector<64x32xbf16>, vector<32x32xf32> -> vector<32x32xf32>
    %c0_21 = arith.constant 0 : index
    %c0_22 = arith.constant 0 : index
    %28 = vector.load %arg9[%c0_21, %c0_22] : memref<1x32xf32, #tpu.memory_space<vmem>>, vector<1x32xf32>
    %29 = vector.broadcast %28 : vector<1x32xf32> to vector<32x32xf32>
    %30 = arith.addf %27, %29 : vector<32x32xf32>
    %cst_23 = arith.constant 0.000000e+00 : f32
    %31 = vector.broadcast %cst_23 : f32 to vector<32x32xf32>
    %32 = arith.maximumf %30, %31 : vector<32x32xf32>
    %33 = arith.truncf %32 : vector<32x32xf32> to vector<32x32xbf16>
    %c0_24 = arith.constant 0 : index
    %c0_25 = arith.constant 0 : index
    %34 = vector.load %arg10[%c0_24, %c0_25] : memref<32x16xbf16, #tpu.memory_space<vmem>>, vector<32x16xbf16>
    %cst_26 = arith.constant dense<0.000000e+00> : vector<32x16xf32>
    %35 = tpu.matmul %33, %34, %cst_26 {dimension_numbers = #tpu.dot_dimension_numbers<[1], [0], [0], [1], [0, 0, 1, 1], [], []>} : vector<32x32xbf16>, vector<32x16xbf16>, vector<32x16xf32> -> vector<32x16xf32>
    %c0_27 = arith.constant 0 : index
    %c0_28 = arith.constant 0 : index
    %36 = vector.load %arg11[%c0_27, %c0_28] : memref<1x16xf32, #tpu.memory_space<vmem>>, vector<1x16xf32>
    %37 = vector.broadcast %36 : vector<1x16xf32> to vector<32x16xf32>
    %38 = arith.addf %35, %37 : vector<32x16xf32>
    %cst_29 = arith.constant 0.000000e+00 : f32
    %39 = vector.broadcast %cst_29 : f32 to vector<32x16xf32>
    %40 = arith.maximumf %38, %39 : vector<32x16xf32>
    %41 = arith.truncf %40 : vector<32x16xf32> to vector<32x16xbf16>
    %c0_30 = arith.constant 0 : index
    %c0_31 = arith.constant 0 : index
    %42 = vector.load %arg12[%c0_30, %c0_31] : memref<16x1xbf16, #tpu.memory_space<vmem>>, vector<16x1xbf16>
    %cst_32 = arith.constant dense<0.000000e+00> : vector<32x1xf32>
    %43 = tpu.matmul %41, %42, %cst_32 {dimension_numbers = #tpu.dot_dimension_numbers<[1], [0], [0], [1], [0, 0, 1, 1], [], []>} : vector<32x16xbf16>, vector<16x1xbf16>, vector<32x1xf32> -> vector<32x1xf32>
    %c0_33 = arith.constant 0 : index
    %c0_34 = arith.constant 0 : index
    %44 = vector.load %arg13[%c0_33, %c0_34] : memref<1x1xf32, #tpu.memory_space<vmem>>, vector<1x1xf32>
    %45 = vector.broadcast %44 : vector<1x1xf32> to vector<32x1xf32>
    %46 = arith.addf %43, %45 : vector<32x1xf32>
    %cst_35 = arith.constant 0.000000e+00 : f32
    %47 = vector.broadcast %cst_35 : f32 to vector<32x1xf32>
    %48 = arith.subf %47, %46 : vector<32x1xf32>
    %49 = math.exp %48 : vector<32x1xf32>
    %cst_36 = arith.constant 1.000000e+00 : f32
    %50 = vector.broadcast %cst_36 : f32 to vector<32x1xf32>
    %51 = arith.addf %50, %49 : vector<32x1xf32>
    %cst_37 = arith.constant 1.000000e+00 : f32
    %52 = vector.broadcast %cst_37 : f32 to vector<32x1xf32>
    %53 = arith.divf %52, %51 : vector<32x1xf32>
    %cst_38 = arith.constant 1.000000e+00 : f32
    %54 = vector.broadcast %cst_38 : f32 to vector<32x1xf32>
    %55 = arith.subf %54, %53 : vector<32x1xf32>
    %c0_39 = arith.constant 0 : index
    %c0_40 = arith.constant 0 : index
    %56 = vector.load %arg14[%c0_39, %c0_40] : memref<32x2xf32, #tpu.memory_space<vmem>>, vector<32x1xf32>
    tpu.vector_store %arg14[%c0_39, %c0_40], %55 {strides = array<i32>} : memref<32x2xf32, #tpu.memory_space<vmem>>, vector<32x1xf32>,
    %c0_41 = arith.constant 0 : index
    %c1 = arith.constant 1 : index
    %57 = vector.load %arg14[%c0_41, %c1] : memref<32x2xf32, #tpu.memory_space<vmem>>, vector<32x1xf32>
    tpu.vector_store %arg14[%c0_41, %c1], %53 {strides = array<i32>} : memref<32x2xf32, #tpu.memory_space<vmem>>, vector<32x1xf32>,
    return
  }
  func.func @transform_0(%arg0: i32) -> (i32, i32) {
    %c0_i32 = arith.constant 0 : i32
    %c0_i32_0 = arith.constant 0 : i32
    return %arg0, %c0_i32 : i32, i32
  }
  func.func @transform_1(%arg0: i32) -> (i32, i32) {
    %c0_i32 = arith.constant 0 : i32
    %c0_i32_0 = arith.constant 0 : i32
    %c0_i32_1 = arith.constant 0 : i32
    return %c0_i32, %c0_i32_0 : i32, i32
  }
  func.func @transform_2(%arg0: i32) -> (i32, i32) {
    %c0_i32 = arith.constant 0 : i32
    %c0_i32_0 = arith.constant 0 : i32
    %c0_i32_1 = arith.constant 0 : i32
    return %c0_i32, %c0_i32_0 : i32, i32
  }
  func.func @transform_3(%arg0: i32) -> (i32, i32) {
    %c0_i32 = arith.constant 0 : i32
    %c0_i32_0 = arith.constant 0 : i32
    %c0_i32_1 = arith.constant 0 : i32
    return %c0_i32, %c0_i32_0 : i32, i32
  }
  func.func @transform_4(%arg0: i32) -> (i32, i32) {
    %c0_i32 = arith.constant 0 : i32
    %c0_i32_0 = arith.constant 0 : i32
    %c0_i32_1 = arith.constant 0 : i32
    return %c0_i32, %c0_i32_0 : i32, i32
  }
  func.func @transform_5(%arg0: i32) -> (i32, i32) {
    %c0_i32 = arith.constant 0 : i32
    %c0_i32_0 = arith.constant 0 : i32
    %c0_i32_1 = arith.constant 0 : i32
    return %c0_i32, %c0_i32_0 : i32, i32
  }
  func.func @transform_6(%arg0: i32) -> (i32, i32) {
    %c0_i32 = arith.constant 0 : i32
    %c0_i32_0 = arith.constant 0 : i32
    %c0_i32_1 = arith.constant 0 : i32
    return %c0_i32, %c0_i32_0 : i32, i32
  }
  func.func @transform_7(%arg0: i32) -> (i32, i32) {
    %c0_i32 = arith.constant 0 : i32
    %c0_i32_0 = arith.constant 0 : i32
    %c0_i32_1 = arith.constant 0 : i32
    return %c0_i32, %c0_i32_0 : i32, i32
  }
  func.func @transform_8(%arg0: i32) -> (i32, i32) {
    %c0_i32 = arith.constant 0 : i32
    %c0_i32_0 = arith.constant 0 : i32
    %c0_i32_1 = arith.constant 0 : i32
    return %c0_i32, %c0_i32_0 : i32, i32
  }
  func.func @transform_9(%arg0: i32) -> (i32, i32) {
    %c0_i32 = arith.constant 0 : i32
    %c0_i32_0 = arith.constant 0 : i32
    %c0_i32_1 = arith.constant 0 : i32
    return %c0_i32, %c0_i32_0 : i32, i32
  }
  func.func @transform_10(%arg0: i32) -> (i32, i32) {
    %c0_i32 = arith.constant 0 : i32
    %c0_i32_0 = arith.constant 0 : i32
    %c0_i32_1 = arith.constant 0 : i32
    return %c0_i32, %c0_i32_0 : i32, i32
  }
  func.func @transform_11(%arg0: i32) -> (i32, i32) {
    %c0_i32 = arith.constant 0 : i32
    %c0_i32_0 = arith.constant 0 : i32
    %c0_i32_1 = arith.constant 0 : i32
    return %c0_i32, %c0_i32_0 : i32, i32
  }
  func.func @transform_12(%arg0: i32) -> (i32, i32) {
    %c0_i32 = arith.constant 0 : i32
    %c0_i32_0 = arith.constant 0 : i32
    %c0_i32_1 = arith.constant 0 : i32
    return %c0_i32, %c0_i32_0 : i32, i32
  }
  func.func @transform_13(%arg0: i32) -> (i32, i32) {
    %c0_i32 = arith.constant 0 : i32
    %c0_i32_0 = arith.constant 0 : i32
    return %arg0, %c0_i32 : i32, i32
  }
}

</mosaic_0001>

<bundles_post_ra>
// kernel: tpu_custom_call.1
= control target key start
LH: loop header
LB: loop body
LE: loop exit
PB: predicated region body
PF: predicated region fallthrough
CT: control target
= control target key end

     0   :  { %s1534_s27 = smov 0   ;;  %s1671_s0 = inlined_call_operand.vmem [shape: f32[64,5], index: 0, kind: input, shape index: {}]   ;;  %s1672_s1 = inlined_call_operand.vmem [shape: bf16[5,256], index: 1, kind: input, shape index: {}]   ;;  %s1673_s2 = inlined_call_operand.vmem [shape: f32[1,256], index: 2, kind: input, shape index: {}]   ;;  %s1674_s3 = inlined_call_operand.vmem [shape: bf16[256,128], index: 3, kind: input, shape index: {}]   ;;  %s1675_s4 = inlined_call_operand.vmem [shape: f32[1,128], index: 4, kind: input, shape index: {}]   ;;  %s1676_s5 = inlined_call_operand.vmem [shape: bf16[128,64], index: 5, kind: input, shape index: {}]   ;;  %s1677_s6 = inlined_call_operand.vmem [shape: f32[1,64], index: 6, kind: input, shape index: {}]   ;;  %s1678_s7 = inlined_call_operand.vmem [shape: bf16[64,32], index: 7, kind: input, shape index: {}]   ;;  %s1679_s8 = inlined_call_operand.vmem [shape: f32[1,32], index: 8, kind: input, shape index: {}]   ;;  %s1680_s9 = inlined_call_operand.vmem [shape: bf16[32,16], index: 9, kind: input, shape index: {}]   ;;  %s1681_s10 = inlined_call_operand.vmem [shape: f32[1,16], index: 10, kind: input, shape index: {}]   ;;  %s1682_s11 = inlined_call_operand.vmem [shape: bf16[16,1], index: 11, kind: input, shape index: {}]   ;;  %s1683_s12 = inlined_call_operand.<no memory space> [shape: f32[1,1], index: 12, kind: input, shape index: {}]   ;;  %s1684_s13 = inlined_call_operand.vmem [shape: f32[64,2], index: 13, kind: output, shape index: {}]  }
   0x1   :  { %v18_v0 = vstv %s1683_s12 }
   0x2   :  { %19 = vst [vmem:[#allocation2] sm:$0x1] %v18_v0 }
   0x3 LB: > { %s1236_s28 = sadd.s32 4294967295, %s1456_s27   ;;  %p1240_p0 = scmp.ge.s32.totalorder %s1456_s27, 1  ;;  %s1456_s27 = sphi %s1534_s27, %s25_s27  }
   0x4   : > { %p390_p1 = scmp.lt.s32.totalorder %s1456_s27, 3 }
   0x6   : > { %p391_p2 = pnand %p1240_p0, %p390_p1 }
   0x7   : > { %v453_v1 = vld [vmem:[%s1672_s1] sm:$0x77] (!%p391_p2)  ;;  %vm478_vm0 = vcmask (!%p391_p2), 1041408   ;;  %vm479_vm1 = vcmask (!%p391_p2), 1042432   ;;  %v1458_v3 = vmov (!%p391_p2), 65535   ;;  %v1459_v6 = vmov (!%p391_p2), 0  }
   0x8   : > { %394 = sbr.rel (%p391_p2) target bundleno = 1503 (0x5df), region = 72  ;;  %v1246_v2 = vcombine.high (!%p391_p2), %v453_v1, %v453_v1  ;;  %v480_v4 = vsel (!%p391_p2), %vm478_vm0, 4294967295, %v1458_v3  ;;  %v1245_v5 = vcombine.low (!%p391_p2), %v453_v1, %v453_v1  ;;  %520 = vmatprep.mubr.bf16.mxu0 (!%p391_p2), %v1459_v6  ;;  %s1241_s12 = sshll.u32 (!%p391_p2), %s1236_s28, 2  ;;  %v1403_v7 = vld [vmem:[%s1674_s3 + $0x40] sm:$0xff] (!%p391_p2)   ;;  %v1405_v12 = vld [vmem:[%s1674_s3 + $0x48] sm:$0xff] (!%p391_p2)   ;;  %v1407_v14 = vld [vmem:[%s1674_s3 + $0x50] sm:$0xff] (!%p391_p2)   ;;  %v456_v35 = vlaneseq (!%p391_p2) }
   0x9   : > { %v481_v8 = vsel (!%p391_p2), %vm479_vm1, %v480_v4, 0  ;;  %p435_p3 = scmp.lt.s32.totalorder (!%p391_p2), %s1241_s12, 7  ;;  %1293 = vmatprep.subr.bf16.mxu1 (!%p391_p2), %v1403_v7  ;;  %v1404_v11 = vld [vmem:[%s1674_s3] sm:$0xff] (!%p391_p2)   ;;  %v1406_v13 = vld [vmem:[%s1674_s3 + $0x8] sm:$0xff] (!%p391_p2)   ;;  %vm471_vm2 = vcmask (!%p391_p2), 39936   ;;  %v1408_v18 = vld [vmem:[%s1674_s3 + $0x10] sm:$0xff] (!%p391_p2)  }
   0xa   : > { %v486_v9 = vand.u32 (!%p391_p2), %v1246_v2, %v481_v8  ;;  %v483_v10 = vand.u32 (!%p391_p2), %v1245_v5, %v481_v8  ;;  %1294 = vmatpush3.bf16.msra.mxu1 (!%p391_p2), %v1404_v11  ;;  %v1409_v19 = vld [vmem:[%s1674_s3 + $0x58] sm:$0xff] (!%p391_p2)   ;;  %v1411_v23 = vld [vmem:[%s1674_s3 + $0x60] sm:$0xff] (!%p391_p2)   ;;  %v1413_v26 = vld [vmem:[%s1674_s3 + $0x68] sm:$0xff] (!%p391_p2)   ;;  %v457_v36 = vshrl.u32 (!%p391_p2), %v456_v35, 7  ;;  %vm908_vm3 = vcmask (!%p391_p2), 523264   ;;  %s1460_s17 = smov (!%p391_p2), 1  }
   0xb   : > { %1295 = vmatprep.subr.bf16.mxu1 (!%p391_p2), %v1405_v12  ;;  %v1410_v22 = vld [vmem:[%s1674_s3 + $0x18] sm:$0xff] (!%p391_p2)   ;;  %v1412_v25 = vld [vmem:[%s1674_s3 + $0x20] sm:$0xff] (!%p391_p2)   ;;  %v1414_v27 = vld [vmem:[%s1674_s3 + $0x28] sm:$0xff] (!%p391_p2)   ;;  %vm993_vm4 = vcmask (!%p391_p2), 261120   ;;  %vm1070_vm5 = vcmask (!%p391_p2), 130048   ;;  %vm1154_vm6 = vcmask (!%p391_p2), 7168  }
   0xc   : > { %488 = vmatprep.subr.bf16.mxu0 (!%p391_p2), %v486_v9  ;;  %v1415_v28 = vld [vmem:[%s1674_s3 + $0x70] sm:$0xff] (!%p391_p2)   ;;  %v1417_v30 = vld [vmem:[%s1674_s3 + $0x78] sm:$0xff] (!%p391_p2)   ;;  %v1419_v32 = vld [vmem:[%s1676_s5] sm:$0xff] (!%p391_p2)   ;;  %v458_v37 = vsub.s32 (!%p391_p2), 0, %v457_v36  ;;  %v462_v39 = vsub.s32 (!%p391_p2), 1, %v457_v36  ;;  %vm1175_vm7 = vcmask (!%p391_p2), 15368  }
   0xd   : > { %489 = vmatpush1.bf16.msra.mxu0 (!%p391_p2), %v483_v10  ;;  %v1416_v29 = vld [vmem:[%s1674_s3 + $0x30] sm:$0xff] (!%p391_p2)   ;;  %v1418_v31 = vld [vmem:[%s1674_s3 + $0x38] sm:$0xff] (!%p391_p2)   ;;  %v1420_v33 = vld [vmem:[%s1676_s5 + $0x8] sm:$0xff] (!%p391_p2)  }
   0xe   : > { %1296 = vmatpush3.bf16.msra.mxu1 (!%p391_p2), %v1406_v13  ;;  %1344 = vmatprep.subr.bf16.mxu0 (!%p391_p2), %v1419_v32  ;;  %v1421_v34 = vld [vmem:[%s1676_s5 + $0x10] sm:$0xff] (!%p391_p2)   ;;  %v454_v38 = vld [vmem:[%s1673_s2] sm:$0x3] (!%p391_p2)  ;;  %v1424_v8 = vld [vmem:[%s1676_s5 + $0x28] sm:$0xff] (!%p391_p2)  }
   0xf   : > { %s1686_s12 = smov (!%p435_p3, %s1241_s12), 7  ;;  %1297 = vmatprep.subr.bf16.mxu1 %v1407_v14  ;;  %v459_v40 = vrot.slane %v454_v38, %v458_v37  ;;  %v463_v41 = vrot.slane %v454_v38, %v462_v39  ;;  %v1423_v7 = vld [vmem:[%s1676_s5 + $0x20] sm:$0xff]   ;;  %v1425_v9 = vld [vmem:[%s1676_s5 + $0x30] sm:$0xff]   ;;  %v1426_v10 = vld [vmem:[%s1676_s5 + $0x38] sm:$0xff]  }
  0x10   : > { %s1242_s22 = sshll.u32 %s1686_s12, 3  ;;  %v1427_v11 = vld [vmem:[%s1678_s7] sm:$0xff]   ;;  %v1428_v12 = vld [vmem:[%s1678_s7 + $0x8] sm:$0xff]   ;;  %v1429_v36 = vld [vmem:[%s1678_s7 + $0x10] sm:$0xff]  }
  0x11   : > { %s438_s28 = scalar_lea.vmem %s1671_s0, %s1242_s22  ;;  %v1249_v14 = vld [vmem:[%s1675_s4] ss:$0 sm:$0xff]  ;;  %v1430_v37 = vld [vmem:[%s1678_s7 + $0x18] sm:$0xff]   ;;  %s444_s16 = scalar_lea.vmem %s1684_s13, %s1242_s22 }
  0x12   : > { %v447_v15 = vld [vmem:[%s438_s28] sm:$0xff]  ;;  %v448_v16 = vld [vmem:[%s438_s28 + $0x8] sm:$0xff]  ;;  %v449_v20 = vld [vmem:[%s438_s28 + $0x10] sm:$0xff]  ;;  %1298 = vmatpush3.bf16.msra.mxu1 %v1408_v18 }
  0x13   : > { %v451_v17 = vpack.c.bf16 %v448_v16, %v447_v15  ;;  %v450_v21 = vld [vmem:[%s438_s28 + $0x18] sm:$0xff]  ;;  %1299 = vmatprep.subr.bf16.mxu1 %v1409_v19  ;;  %v1266_v38 = vld [vmem:[%s1677_s6] ss:$0 sm:$0xff] }
  0x14   : > { %v452_v24 = vpack.c.bf16 %v450_v21, %v449_v20 }
  0x15   : > { %1247 = vmatmul.mubr.msk.bf16.vlgmr.msra.gmra.mrb[0].mxu0 %vm471_vm2, %v451_v17 }
  0x16   : > { %530 = vmatprep.mubr.bf16.mxu0 %v1459_v6  ;;  %1300 = vmatpush3.bf16.msra.mxu1 %v1410_v22  ;;  %v1422_v6 = vld [vmem:[%s1676_s5 + $0x18] sm:$0xff]  }
  0x17   : > { %1301 = vmatprep.subr.bf16.mxu1 %v1411_v23  ;;  %1345 = vmatpush3.bf16.msra.mxu0 %v1419_v32 }
  0x18   : > { %1346 = vmatprep.subr.bf16.mxu0 %v1420_v33 }
  0x1a   : > { %1302 = vmatpush3.bf16.msra.mxu1 %v1412_v25 }
  0x1b   : > { %1303 = vmatprep.subr.bf16.mxu1 %v1413_v26  ;;  %1347 = vmatpush3.bf16.msra.mxu0 %v1420_v33 }
  0x1c   : > { %1348 = vmatprep.subr.bf16.mxu0 %v1421_v34 }
  0x1d   : > { %1248 = vmatmul.mubr.msk.bf16.gmra.mrb[4].mxu0 %vm471_vm2, %v452_v24 }
  0x1e   : > { %1304 = vmatpush3.bf16.msra.mxu1 %v1414_v27 }
  0x1f   : > { %1305 = vmatprep.subr.bf16.mxu1 %v1415_v28  ;;  %1349 = vmatpush3.bf16.msra.mxu0 %v1421_v34 }
  0x20   : > { %1350 = vmatprep.subr.bf16.mxu0 %v1422_v6 }
  0x22   : > { %1306 = vmatpush3.bf16.msra.mxu1 %v1416_v29 }
  0x23   : > { %1307 = vmatprep.subr.bf16.mxu1 %v1417_v30  ;;  %1351 = vmatpush3.bf16.msra.mxu0 %v1422_v6  ;;  %v1433_v6 = vld [vmem:[%s1682_s11] sm:$0xff]  }
  0x24   : > { %1352 = vmatprep.subr.bf16.mxu0 %v1423_v7 }
  0x26   : > { %1308 = vmatpush3.bf16.msra.mxu1 %v1418_v31 }
  0x27   : > { %1353 = vmatpush3.bf16.msra.mxu0 %v1423_v7  ;;  %1364 = vmatprep.subr.bf16.mxu1 %v1427_v11  ;;  %v1282_v7 = vld [vmem:[%s1681_s10] ss:$0 sm:$0xff] }
  0x28   : > { %1354 = vmatprep.subr.bf16.mxu0 %v1424_v8 }
  0x2b   : > { %1355 = vmatpush3.bf16.msra.mxu0 %v1424_v8 }
  0x2c   : > { %1356 = vmatprep.subr.bf16.mxu0 %v1425_v9 }
  0x2f   : > { %1357 = vmatpush3.bf16.msra.mxu0 %v1425_v9 }
  0x30   : > { %1358 = vmatprep.subr.bf16.mxu0 %v1426_v10 }
  0x33   : > { %1359 = vmatpush3.bf16.msra.mxu0 %v1426_v10 }
  0xe8   : > { %v522_v42 = vpop.f32.mrb[0].mxu0 }
  0xe9   : > { %v523_v43 = vadd.f32 %v522_v42, %v459_v40  ;;  %v524_v44 = vpop.f32.mrb[1].mxu0 }
  0xea   : > { %v525_v45 = vadd.f32 %v524_v44, %v463_v41  ;;  %v526_v46 = vpop.f32.mrb[2].mxu0 }
  0xeb   : > { %v527_v47 = vadd.f32 %v526_v46, %v459_v40  ;;  %v528_v48 = vpop.f32.mrb[3].mxu0  ;;  %v541_v50 = vmax.f32 %v523_v43, 0.0 }
  0xec   : > { %v529_v49 = vadd.f32 %v528_v48, %v463_v41  ;;  %v542_v52 = vmax.f32 %v525_v45, 0.0 }
  0xed   : > { %v543_v51 = vmax.f32 %v527_v47, 0.0 }
  0xee   : > { %v544_v53 = vmax.f32 %v529_v49, 0.0 }
  0xef   : > { %v549_v54 = vpack.c.bf16 %v543_v51, %v541_v50 }
  0xf0   : > { %v532_v55 = vpop.f32.mrb[4].mxu0  ;;  %v550_v56 = vpack.c.bf16 %v544_v53, %v542_v52  ;;  %v1431_v53 = vld [vmem:[%s1680_s9] sm:$0xff]  }
  0xf1   : > { %v533_v57 = vadd.f32 %v532_v55, %v459_v40  ;;  %v534_v58 = vpop.f32.mrb[5].mxu0  ;;  %1376 = vmatprep.subr.bf16.mxu0 %v1431_v53  ;;  %v1275_v55 = vld [vmem:[%s1679_s8] ss:$0 sm:$0xff] }
  0xf2   : > { %v535_v59 = vadd.f32 %v534_v58, %v463_v41  ;;  %v536_v60 = vpop.f32.mrb[6].mxu0  ;;  %720 = vmatprep.mubr.bf16.mxu1 %v550_v56 }
  0xf3   : > { %v537_v61 = vadd.f32 %v536_v60, %v459_v40  ;;  %v538_v62 = vpop.f32.mrb[7].mxu0  ;;  %721 = vmatmul.mubr.bf16.vlgmr.msra.gmra.mrb[0].mxu1 %v549_v54  ;;  %v545_v0 = vmax.f32 %v533_v57, 0.0  ;;  %v1432_v54 = vld [vmem:[%s1680_s9 + $0x8] sm:$0xff]  }
  0xf4   : > { %v539_v63 = vadd.f32 %v538_v62, %v463_v41  ;;  %v546_v2 = vmax.f32 %v535_v59, 0.0  ;;  %1365 = vmatpush3.bf16.msra.mxu1 %v1427_v11 }
  0xf5   : > { %v547_v1 = vmax.f32 %v537_v61, 0.0  ;;  %1366 = vmatprep.subr.bf16.mxu1 %v1428_v12 }
  0xf6   : > { %v548_v3 = vmax.f32 %v539_v63, 0.0 }
  0xf7   : > { %v551_v4 = vpack.c.bf16 %v547_v1, %v545_v0 }
  0xf8   : > { %v552_v5 = vpack.c.bf16 %v548_v3, %v546_v2  ;;  %1367 = vmatpush3.bf16.msra.mxu1 %v1428_v12 }
  0xf9   : > { %1368 = vmatprep.subr.bf16.mxu1 %v1429_v36 }
  0xfa   : > { %728 = vmatprep.mubr.bf16.mxu1 %v552_v5 }
  0xfb   : > { %729 = vmatmul.mubr.bf16.gmra.mrb[4].mxu1 %v551_v4 }
  0xfc   : > { %1369 = vmatpush3.bf16.msra.mxu1 %v1429_v36 }
  0xfd   : > { %1370 = vmatprep.subr.bf16.mxu1 %v1430_v37 }
 0x100   : > { %1371 = vmatpush3.bf16.msra.mxu1 %v1430_v37 }
 0x1c6   : > { %v1309_v13 = vpop.f32.mrb[0].mxu1 }
 0x1c7   : > { %v1310_v15 = vpop.f32.mrb[1].mxu1 }
 0x1c8   : > { %v1311_v16 = vadd.f32 %v1310_v15, %v1309_v13  ;;  %v1312_v17 = vpop.f32.mrb[2].mxu1 }
 0x1c9   : > { %v1313_v18 = vpop.f32.mrb[3].mxu1 }
 0x1ca   : > { %v723_v19 = vadd.f32 %v1311_v16, %v1249_v14  ;;  %v1314_v20 = vadd.f32 %v1313_v18, %v1312_v17 }
 0x1cc   : > { %v726_v21 = vadd.f32 %v1314_v20, %v1249_v14  ;;  %v737_v22 = vmax.f32 %v723_v19, 0.0 }
 0x1ce   : > { %v738_v23 = vmax.f32 %v726_v21, 0.0  ;;  %v1315_v24 = vpop.f32.mrb[4].mxu1 }
 0x1cf   : > { %v1316_v25 = vpop.f32.mrb[5].mxu1 }
 0x1d0   : > { %v1317_v26 = vadd.f32 %v1316_v25, %v1315_v24  ;;  %v1318_v27 = vpop.f32.mrb[6].mxu1  ;;  %v741_v28 = vpack.c.bf16 %v738_v23, %v737_v22  ;;  %v1287_v22 = vld [vmem:[#allocation2] ss:$0 sm:$0xff] }
 0x1d1   : > { %v1319_v29 = vpop.f32.mrb[7].mxu1 }
 0x1d2   : > { %v731_v30 = vadd.f32 %v1317_v26, %v1249_v14  ;;  %v1320_v31 = vadd.f32 %v1319_v29, %v1318_v27  ;;  %1360 = vmatprep.mubr.bf16.mxu0 %v741_v28 }
 0x1d4   : > { %v734_v32 = vadd.f32 %v1320_v31, %v1249_v14  ;;  %v739_v33 = vmax.f32 %v731_v30, 0.0 }
 0x1d6   : > { %v740_v34 = vmax.f32 %v734_v32, 0.0 }
 0x1d8   : > { %v742_v35 = vpack.c.bf16 %v740_v34, %v739_v33 }
 0x1da   : > { %1361 = vmatmul.mubr.bf16.vlgmr.msra.gmra.mrb[8].mxu0 %v742_v35 }
 0x1db   : > { %1377 = vmatpush3.bf16.msra.mxu0 %v1431_v53 }
 0x1dc   : > { %1378 = vmatprep.subr.bf16.mxu0 %v1432_v54 }
 0x1df   : > { %1379 = vmatpush3.bf16.msra.mxu0 %v1432_v54 }
 0x1e0   : > { %1384 = vmatprep.subr.bf16.mxu0 %v1433_v6 }
 0x2ad   : > { %v1362_v39 = vpop.f32.mrb[8].mxu0 }
 0x2ae   : > { %v857_v40 = vadd.f32 %v1362_v39, %v1266_v38  ;;  %v848_v41 = vpop.f32.mrb[9].mxu0 }
 0x2af   : > { %v849_v42 = vadd.f32 %v1266_v38, %v848_v41  ;;  %v1363_v43 = vpop.f32.mrb[10].mxu0 }
 0x2b0   : > { %v860_v44 = vadd.f32 %v1363_v43, %v1266_v38  ;;  %v851_v45 = vpop.f32.mrb[11].mxu0  ;;  %v865_v47 = vmax.f32 %v857_v40, 0.0 }
 0x2b1   : > { %v852_v46 = vadd.f32 %v1266_v38, %v851_v45  ;;  %v863_v49 = vmax.f32 %v849_v42, 0.0 }
 0x2b2   : > { %v866_v48 = vmax.f32 %v860_v44, 0.0 }
 0x2b3   : > { %v864_v50 = vmax.f32 %v852_v46, 0.0 }
 0x2b4   : > { %v868_v51 = vpack.c.bf16 %v866_v48, %v865_v47 }
 0x2b5   : > { %v867_v52 = vpack.c.bf16 %v864_v50, %v863_v49 }
 0x2b7   : > { %1372 = vmatprep.mubr.msk.bf16.mxu1 %vm908_vm3, %v867_v52 }
 0x2b8   : > { %1373 = vmatmul.mubr.msk.bf16.vlgmr.msra.gmra.mrb[8].mxu1 %vm908_vm3, %v868_v51 }
 0x38b   : > { %v1374_v56 = vpop.f32.mrb[8].mxu1 }
 0x38c   : > { %v958_v57 = vadd.f32 %v1374_v56, %v1275_v55  ;;  %v949_v58 = vpop.f32.mrb[9].mxu1 }
 0x38d   : > { %v950_v59 = vadd.f32 %v1275_v55, %v949_v58  ;;  %v1375_v60 = vpop.f32.mrb[10].mxu1 }
 0x38e   : > { %v961_v61 = vadd.f32 %v1375_v60, %v1275_v55  ;;  %v952_v62 = vpop.f32.mrb[11].mxu1  ;;  %v966_v0 = vmax.f32 %v958_v57, 0.0 }
 0x38f   : > { %v953_v63 = vadd.f32 %v1275_v55, %v952_v62  ;;  %v964_v2 = vmax.f32 %v950_v59, 0.0 }
 0x390   : > { %v967_v1 = vmax.f32 %v961_v61, 0.0 }
 0x391   : > { %v965_v3 = vmax.f32 %v953_v63, 0.0 }
 0x392   : > { %v969_v4 = vpack.c.bf16 %v967_v1, %v966_v0 }
 0x393   : > { %v968_v5 = vpack.c.bf16 %v965_v3, %v964_v2 }
 0x395   : > { %1380 = vmatprep.mubr.msk.bf16.mxu0 %vm993_vm4, %v968_v5 }
 0x396   : > { %1381 = vmatmul.mubr.msk.bf16.vlgmr.msra.gmra.mrb[12].mxu0 %vm993_vm4, %v969_v4 }
 0x397   : > { %1385 = vmatpush3.bf16.msra.mxu0 %v1433_v6 }
 0x469   : > { %v1382_v8 = vpop.f32.mrb[12].mxu0 }
 0x46a   : > { %v1043_v9 = vadd.f32 %v1382_v8, %v1282_v7  ;;  %v1034_v10 = vpop.f32.mrb[13].mxu0 }
 0x46b   : > { %v1035_v11 = vadd.f32 %v1282_v7, %v1034_v10  ;;  %v1383_v12 = vpop.f32.mrb[14].mxu0 }
 0x46c   : > { %v1046_v13 = vadd.f32 %v1383_v12, %v1282_v7  ;;  %v1037_v14 = vpop.f32.mrb[15].mxu0  ;;  %v1051_v16 = vmax.f32 %v1043_v9, 0.0 }
 0x46d   : > { %v1038_v15 = vadd.f32 %v1282_v7, %v1037_v14  ;;  %v1049_v18 = vmax.f32 %v1035_v11, 0.0 }
 0x46e   : > { %v1052_v17 = vmax.f32 %v1046_v13, 0.0 }
 0x46f   : > { %v1050_v19 = vmax.f32 %v1038_v15, 0.0 }
 0x470   : > { %v1054_v20 = vpack.c.bf16 %v1052_v17, %v1051_v16 }
 0x471   : > { %v1053_v21 = vpack.c.bf16 %v1050_v19, %v1049_v18 }
 0x473   : > { %1386 = vmatprep.mubr.msk.bf16.mxu0 %vm1070_vm5, %v1053_v21 }
 0x474   : > { %1387 = vmatmul.mubr.msk.bf16.vlgmr.msra.gmra.mrb[16].mxu0 %vm1070_vm5, %v1054_v20 }
 0x547   : > { %v1388_v23 = vpop.f32.mrb[16].mxu0 }
 0x548   : > { %v1120_v24 = vadd.f32 %v1388_v23, %v1287_v22  ;;  %v1111_v25 = vpop.f32.mrb[17].mxu0 }
 0x549   : > { %v1112_v26 = vadd.f32 %v1287_v22, %v1111_v25  ;;  %v1389_v27 = vpop.f32.mrb[18].mxu0 }
 0x54a   : > { %v1128_v28 = vsub.f32 0.0, %v1120_v24  ;;  %v1123_v29 = vadd.f32 %v1389_v27, %v1287_v22  ;;  %v1114_v30 = vpop.f32.mrb[19].mxu0 }
 0x54b   : > { %v1126_v31 = vsub.f32 0.0, %v1112_v26  ;;  %v1115_v32 = vadd.f32 %v1287_v22, %v1114_v30 }
 0x54c   : > { %v1134_v33 = vmul.f32 1.442695, %v1128_v28  ;;  %v1129_v34 = vsub.f32 0.0, %v1123_v29 }
 0x54d   : > { %v1130_v35 = vmul.f32 1.442695, %v1126_v31  ;;  %v1127_v36 = vsub.f32 0.0, %v1115_v32 }
 0x54e   : > { %1434 = vpow2.f32 %v1134_v33  ;;  %v1136_v37 = vmul.f32 1.442695, %v1129_v34 }
 0x54f   : > { %1436 = vpow2.f32 %v1130_v35  ;;  %v1132_v38 = vmul.f32 1.442695, %v1127_v36 }
 0x550   : > { %1438 = vpow2.f32 %v1136_v37 }
 0x551   : > { %1440 = vpow2.f32 %v1132_v38 }
 0x558   : > { %v1435_v39 = vpop.eup %1434 }
 0x559   : > { %v1437_v40 = vpop.eup %1436  ;;  %v1140_v41 = vadd.f32 1.0, %v1435_v39 }
 0x55a   : > { %v1439_v42 = vpop.eup %1438  ;;  %v1138_v43 = vadd.f32 1.0, %v1437_v40 }
 0x55b   : > { %v1441_v44 = vpop.eup %1440  ;;  %1442 = vrcp.f32 %v1140_v41  ;;  %v1141_v45 = vadd.f32 1.0, %v1439_v42 }
 0x55c   : > { %1444 = vrcp.f32 %v1138_v43  ;;  %v1139_v46 = vadd.f32 1.0, %v1441_v44 }
 0x55d   : > { %1446 = vrcp.f32 %v1141_v45 }
 0x55e   : > { %1448 = vrcp.f32 %v1139_v46 }
 0x565   : > { %v1443_v47 = vpop.eup %1442 }
 0x566   : > { %v1445_v48 = vpop.eup %1444  ;;  %1167 = vrot.lane.b32.xlu1 %v1443_v47, %s1460_s17  ;;  %v1152_v53 = vsub.f32 1.0, %v1443_v47 }
 0x567   : > { %v1447_v49 = vpop.eup %1446  ;;  %v1150_v50 = vsub.f32 1.0, %v1445_v48  ;;  %1163 = vrot.lane.b32.xlu0 %v1445_v48, %s1460_s17 }
 0x568   : > { %v1449_v51 = vpop.eup %1448  ;;  %v1153_v54 = vsub.f32 1.0, %v1447_v49  ;;  %1157 = vst.msk [vmem:[%s444_s16 + $0x10] sm:$0xff] %vm1154_vm6, %v1152_v53 }
 0x569   : > { %v1151_v52 = vsub.f32 1.0, %v1449_v51  ;;  %1155 = vst.msk [vmem:[%s444_s16] sm:$0xff] %vm1154_vm6, %v1150_v50 }
 0x56a   : > { %1169 = vrot.lane.b32.xlu1 %v1447_v49, %s1460_s17  ;;  %1158 = vst.msk [vmem:[%s444_s16 + $0x18] sm:$0xff] %vm1154_vm6, %v1153_v54 }
 0x56b   : > { %1165 = vrot.lane.b32.xlu0 %v1449_v51, %s1460_s17  ;;  %1156 = vst.msk [vmem:[%s444_s16 + $0x8] sm:$0xff] %vm1154_vm6, %v1151_v52 }
 0x5d8   : > { %v1168_v55 = vpop.permute.xlu1 %1167 }
 0x5d9   : > { %v1164_v56 = vpop.permute.xlu0 %1163  ;;  %1178 = vst.msk [vmem:[%s444_s16 + $0x10] sm:$0xff] %vm1175_vm7, %v1168_v55 }
 0x5da   : > { %1176 = vst.msk [vmem:[%s444_s16] sm:$0xff] %vm1175_vm7, %v1164_v56 }
 0x5dc   : > { %v1170_v58 = vpop.permute.xlu1 %1169 }
 0x5dd   : > { %v1166_v57 = vpop.permute.xlu0 %1165  ;;  %1179 = vst.msk [vmem:[%s444_s16 + $0x18] sm:$0xff] %vm1175_vm7, %v1170_v58 }
 0x5de   : > { %1177 = vst.msk [vmem:[%s444_s16 + $0x8] sm:$0xff] %vm1175_vm7, %v1166_v57 }
 0x5df PF: > { %s25_s27 = sadd.s32 1, %s1456_s27  }
 0x5e0   : > { %p22_p4 = scmp.ge.s32.totalorder %s25_s27, 4  }
 0x5e2   :  { %24 = sbr.rel (!%p22_p4) target bundleno = 3 (0x3), region = 102 }

</bundles_post_ra>
